<compile_context>
chip_gen: v7x
topology: tpu7x:2x2x1
jax: 0.10.0
libtpu: 0.0.40
codegen_flags: <defaults>
</compile_context>

<pallas_src>
import jax
import jax.numpy as jnp
from jax.experimental import pallas as pl
from jax.experimental.pallas import tpu as pltpu


# ----------------------------------------------------------------------------
# Kernel body: elementwise channel gate * spatial-SE on one (C, THW) tile.
# ----------------------------------------------------------------------------
def _scse_apply_kernel(x_ref, chn_ref, ws_ref, o_ref):
    # x_ref:   (C, THW)  one HW tile of one batch element (channels on sublanes)
    # chn_ref: (C, 1)    precomputed channel-excitation gate for this batch (f32)
    # ws_ref:  (C, 1)    spatial-SE 1x1 conv weight (f32)
    # o_ref:   (C, THW)  same dtype as x
    x = x_ref[...].astype(jnp.float32)

    # Spatial squeeze: 1x1 conv (C -> 1) == per-channel scale + sum over C.
    # Pure VPU work; garbage lanes of a ragged final tile stay in their own
    # lanes (sublane-only reduction) and are masked on the partial store.
    s = jnp.sum(x * ws_ref[...], axis=0, keepdims=True)    # (1, THW)
    spa_se = jax.nn.sigmoid(s)                              # (1, THW)

    # x * chn_se (lane-broadcast) * spa_se (sublane-broadcast)
    o_ref[...] = (x * chn_ref[...] * spa_se).astype(o_ref.dtype)


# ----------------------------------------------------------------------------
# Generation-aware tile / VMEM budgets.
# ----------------------------------------------------------------------------
def _vmem_budget():
    """Returns (max_tile_bytes, vmem_limit_bytes).

    Live VMEM ~= 4x tile (input + output double buffers) plus tiny gates.
    v5e/v6e: 128 MiB physical VMEM -> big tiles under a generous limit.
    v7x:      64 MiB per TensorCore -> mid-size tiles under ~48 MiB.
    Falls back to the tighter (v7x-safe) budget if the query fails.
    """
    try:
        vmem_bytes = int(pltpu.get_tpu_info().vmem_capacity_bytes)
    except Exception:
        vmem_bytes = 64 * 1024 * 1024
    if vmem_bytes >= 96 * 1024 * 1024:            # v5e / v6e
        return 12 * 1024 * 1024, 80 * 1024 * 1024
    return 8 * 1024 * 1024, 48 * 1024 * 1024      # v7x (or unknown)


def _pick_hw_tile(HW, C, itemsize, max_tile_bytes):
    """Largest lane-dense (multiple-of-128) spatial tile with one (C, THW)
    block around max_tile_bytes. An even divisor of HW is preferred only if it
    is >= max_lanes/2; otherwise use max_lanes and accept a masked ragged
    final tile (avoids collapsing to 128-lane tiles on unfriendly HW)."""
    max_lanes = (max_tile_bytes // max(1, C * itemsize)) // 128 * 128
    max_lanes = max(128, min(max_lanes, 65536))
    if HW <= max_lanes:
        return HW                                  # full extent: always legal
    if HW % 128 == 0:
        floor = max(128, max_lanes // 2)
        t = max_lanes
        while t >= floor and HW % t != 0:
            t -= 128
        if t >= floor and HW % t == 0:
            return t                               # near-max even divisor
    return max_lanes                               # ragged tail: masked by Pallas


# ----------------------------------------------------------------------------
# Wrapper.
# ----------------------------------------------------------------------------
def scse_block(x_nchw, w1, b1, w2, b2, w_spatial, *,
               donate_x=False, max_tile_bytes=None):
    """ModifiedSCSEBlock forward.

    x_nchw:    (B, C, H, W), float32 or bfloat16 (streamed in its own dtype).
    w1:        (C, Cr)  == nn.Linear(C, Cr).weight.T
    b1:        (Cr,)    == nn.Linear(C, Cr).bias
    w2:        (Cr, C)  == nn.Linear(Cr, C).weight.T
    b2:        (C,)     == nn.Linear(Cr, C).bias
    w_spatial: (C,)     == nn.Conv2d(C, 1, 1, bias=False).weight.reshape(C)
    donate_x:  alias the output HBM buffer onto x (only if the caller does not
               use x afterwards).
    """
    B, C, H, W = x_nchw.shape
    HW = H * W
    Cr = w1.shape[1]
    assert w1.shape == (C, Cr), "w1 must be (C, Cr): nn.Linear(C,Cr).weight transposed"
    assert b1.shape == (Cr,), "b1 must be (Cr,)"
    assert w2.shape == (Cr, C), "w2 must be (Cr, C): nn.Linear(Cr,C).weight transposed"
    assert b2.shape == (C,), "b2 must be (C,)"
    assert w_spatial.shape == (C,), "w_spatial must be flattened from (1, C, 1, 1)"

    # Free reshape (contiguous collapse of H, W): no transpose, no extra HBM pass.
    x = x_nchw.reshape(B, C, HW)
    dtype = x.dtype
    itemsize = jnp.dtype(dtype).itemsize

    # --- channel-excitation gate (tiny: B*C*Cr work; plain XLA, f32 math) ---
    # TODO(synk): if the producer of x already streams it, accumulate this mean
    # there instead to drop one full HBM read of x (~33% of this op's traffic).
    pooled = jnp.mean(x.astype(jnp.float32), axis=2)                      # (B, C)
    h = jnp.maximum(pooled @ w1.astype(jnp.float32) + b1.astype(jnp.float32), 0.0)
    chn_se = jax.nn.sigmoid(h @ w2.astype(jnp.float32) + b2.astype(jnp.float32))
    chn_se = chn_se.reshape(B, C, 1).astype(jnp.float32)                  # (B, C, 1)

    ws = w_spatial.reshape(C, 1).astype(jnp.float32)                      # (C, 1)

    # --- tiling (generation-aware) ---
    tile_budget, vmem_limit = _vmem_budget()
    if max_tile_bytes is not None:
        tile_budget = max_tile_bytes
    THW = _pick_hw_tile(HW, C, itemsize, tile_budget)
    n_hw = pl.cdiv(HW, THW)

    # v7x megacore: keep both TensorCores busy when the grid would otherwise be
    # a single step (a harmless single extra step on v5e/v6e).
    if B * n_hw < 2 and HW > 128:
        THW = ((HW + 1) // 2 + 127) // 128 * 128
        n_hw = pl.cdiv(HW, THW)

    cost = pl.CostEstimate(
        flops=4 * B * C * HW,
        transcendentals=B * HW,
        bytes_accessed=2 * B * C * HW * itemsize + (B * C + C) * 4,
    )

    out = pl.pallas_call(
        _scse_apply_kernel,
        out_shape=jax.ShapeDtypeStruct((B, C, HW), dtype),
        grid=(B, n_hw),
        in_specs=[
            # batch dim squeezed out; kernel sees (C, THW)
            pl.BlockSpec((None, C, THW), lambda b, t: (b, 0, t)),
            # per-batch channel gate, resident across HW tiles
            pl.BlockSpec((None, C, 1), lambda b, t: (b, 0, 0)),
            # spatial 1x1 conv weight, resident across the whole grid
            pl.BlockSpec((C, 1), lambda b, t: (0, 0)),
        ],
        out_specs=pl.BlockSpec((None, C, THW), lambda b, t: (b, 0, t)),
        compiler_params=pltpu.CompilerParams(
            dimension_semantics=("parallel", "parallel"),
            vmem_limit_bytes=vmem_limit),
        cost_estimate=cost,
        input_output_aliases=({0: 0} if donate_x else {}),
    )(x, chn_se, ws)

    return out.reshape(B, C, H, W)


# ----------------------------------------------------------------------------
# Pure-JAX reference matching the PyTorch forward (NCHW).
# ----------------------------------------------------------------------------
def _reference(x, w1, b1, w2, b2, w_spatial):
    B, C, H, W = x.shape
    xf = x.astype(jnp.float32)
    pooled = jnp.mean(xf, axis=(2, 3))                                  # (B, C)
    h = jnp.maximum(pooled @ w1 + b1, 0.0)                              # (B, Cr)
    chn = jax.nn.sigmoid(h @ w2 + b2).reshape(B, C, 1, 1)               # (B, C, 1, 1)
    spa = jax.nn.sigmoid(
        jnp.einsum("bchw,c->bhw", xf, w_spatial))[:, None, :, :]        # (B, 1, H, W)
    return (xf * chn * spa).astype(x.dtype)


if __name__ == "__main__":
    key = jax.random.PRNGKey(0)
    kx, k1, kb1, k2, kb2, ks = jax.random.split(key, 6)

    B, C, H, W = 2, 4, 16, 16
    reduction = 2
    Cr = C // reduction

    x = jax.random.normal(kx, (B, C, H, W), dtype=jnp.float32)
    # nn.Linear(C, Cr): weight (Cr, C), bias (Cr)  -> stored transposed here.
    w1 = jax.random.normal(k1, (C, Cr), dtype=jnp.float32) * 0.5
    b1 = jax.random.normal(kb1, (Cr,), dtype=jnp.float32) * 0.1
    # nn.Linear(Cr, C): weight (C, Cr), bias (C)   -> stored transposed here.
    w2 = jax.random.normal(k2, (Cr, C), dtype=jnp.float32) * 0.5
    b2 = jax.random.normal(kb2, (C,), dtype=jnp.float32) * 0.1
    # nn.Conv2d(C, 1, kernel_size=1, bias=False): weight (1, C, 1, 1) -> (C,)
    w_spatial = jax.random.normal(ks, (C,), dtype=jnp.float32) * 0.5

    # 1) Baseline f32, single full-extent HW tile per batch element.
    out = jax.block_until_ready(scse_block(x, w1, b1, w2, b2, w_spatial))
    ref = _reference(x, w1, b1, w2, b2, w_spatial)
    assert out.shape == (B, C, H, W)
    assert jnp.allclose(out, ref, atol=1e-5, rtol=1e-5), "f32 mismatch"

    # 2) Multi-tile + ragged tail: HW = 400 with forced THW = 256
    #    (n_hw = 2, last tile partially masked).
    H2, W2 = 20, 20
    x2 = jax.random.normal(jax.random.PRNGKey(1), (B, C, H2, W2), dtype=jnp.float32)
    out2 = jax.block_until_ready(
        scse_block(x2, w1, b1, w2, b2, w_spatial, max_tile_bytes=C * 256 * 4))
    ref2 = _reference(x2, w1, b1, w2, b2, w_spatial)
    assert jnp.allclose(out2, ref2, atol=1e-5, rtol=1e-5), "ragged multi-tile mismatch"

    # 3) B=1 single-tile HW: megacore-balance path splits into 2 lane-dense tiles.
    x3 = jax.random.normal(jax.random.PRNGKey(2), (1, C, 16, 16), dtype=jnp.float32)
    out3 = jax.block_until_ready(scse_block(x3, w1, b1, w2, b2, w_spatial))
    ref3 = _reference(x3, w1, b1, w2, b2, w_spatial)
    assert jnp.allclose(out3, ref3, atol=1e-5, rtol=1e-5), "megacore-split mismatch"

    # 4) bf16 streaming (halves HBM traffic; math stays f32 in-kernel).
    xb = x.astype(jnp.bfloat16)
    outb = jax.block_until_ready(scse_block(xb, w1, b1, w2, b2, w_spatial))
    refb = _reference(xb, w1, b1, w2, b2, w_spatial)
    assert outb.dtype == jnp.bfloat16
    assert jnp.allclose(outb.astype(jnp.float32), refb.astype(jnp.float32),
                        atol=5e-2, rtol=5e-2), "bf16 mismatch"

    print("KERNEL_OK")
</pallas_src>

<mosaic_0001>
module attributes {stable_mosaic.version = 11 : i64} {
  func.func @_scse_apply_kernel(%arg0: i32, %arg1: i32, %arg2: memref<1x4x256xf32, #tpu.memory_space<vmem>>, %arg3: memref<1x4x1xf32, #tpu.memory_space<vmem>>, %arg4: memref<4x1xf32, #tpu.memory_space<vmem>>, %arg5: memref<1x4x256xf32, #tpu.memory_space<vmem>>) attributes {dimension_semantics = [#tpu.dimension_semantics<parallel>, #tpu.dimension_semantics<parallel>], iteration_bounds = array<i64: 2, 1>, scalar_prefetch = 0 : i64, scratch_operands = 0 : i64, tpu.core_type = #tpu.core_type<tc>, window_params = [{transform_indices = @transform_0, window_bounds = array<i64: 1, 4, 256>}, {transform_indices = @transform_1, window_bounds = array<i64: 1, 4, 1>}, {pipeline_mode = #tpu.pipeline_mode<synchronous>, transform_indices = @transform_2, window_bounds = array<i64: 4, 1>}, {transform_indices = @transform_3, window_bounds = array<i64: 1, 4, 256>}]} {
    %c0 = arith.constant 0 : index
    %c0_0 = arith.constant 0 : index
    %c0_1 = arith.constant 0 : index
    %0 = vector.load %arg2[%c0, %c0_0, %c0_1] : memref<1x4x256xf32, #tpu.memory_space<vmem>>, vector<1x4x256xf32>
    %1 = vector.shape_cast %0 : vector<1x4x256xf32> to vector<4x256xf32>
    %c0_2 = arith.constant 0 : index
    %c0_3 = arith.constant 0 : index
    %2 = vector.load %arg4[%c0_2, %c0_3] : memref<4x1xf32, #tpu.memory_space<vmem>>, vector<4x1xf32>
    %3 = vector.broadcast %2 : vector<4x1xf32> to vector<4x256xf32>
    %4 = arith.mulf %1, %3 : vector<4x256xf32>
    %cst = arith.constant dense<0.000000e+00> : vector<256xf32>
    %5 = vector.multi_reduction <add>, %4, %cst [0] : vector<4x256xf32> to vector<256xf32>
    %6 = vector.shape_cast %5 : vector<256xf32> to vector<1x256xf32>
    %7 = arith.negf %6 : vector<1x256xf32>
    %8 = math.exp %7 : vector<1x256xf32>
    %cst_4 = arith.constant 1.000000e+00 : f32
    %9 = vector.broadcast %cst_4 : f32 to vector<1x256xf32>
    %10 = arith.addf %9, %8 : vector<1x256xf32>
    %11 = arith.divf %9, %10 : vector<1x256xf32>
    %c0_5 = arith.constant 0 : index
    %c0_6 = arith.constant 0 : index
    %c0_7 = arith.constant 0 : index
    %12 = vector.load %arg3[%c0_5, %c0_6, %c0_7] : memref<1x4x1xf32, #tpu.memory_space<vmem>>, vector<1x4x1xf32>
    %13 = vector.shape_cast %12 : vector<1x4x1xf32> to vector<4x1xf32>
    %14 = vector.broadcast %13 : vector<4x1xf32> to vector<4x256xf32>
    %15 = arith.mulf %1, %14 : vector<4x256xf32>
    %16 = vector.broadcast %11 : vector<1x256xf32> to vector<4x256xf32>
    %17 = arith.mulf %15, %16 : vector<4x256xf32>
    %c0_8 = arith.constant 0 : index
    %c0_9 = arith.constant 0 : index
    %c0_10 = arith.constant 0 : index
    %18 = vector.load %arg5[%c0_8, %c0_9, %c0_10] : memref<1x4x256xf32, #tpu.memory_space<vmem>>, vector<1x4x256xf32>
    %19 = vector.shape_cast %18 : vector<1x4x256xf32> to vector<4x256xf32>
    %20 = vector.shape_cast %17 : vector<4x256xf32> to vector<1x4x256xf32>
    tpu.vector_store %arg5[%c0_8, %c0_9, %c0_10], %20 {strides = array<i32>} : memref<1x4x256xf32, #tpu.memory_space<vmem>>, vector<1x4x256xf32>,
    return
  }
  func.func @transform_0(%arg0: i32, %arg1: i32) -> (i32, i32, i32) {
    %c0_i32 = arith.constant 0 : i32
    %c0_i32_0 = arith.constant 0 : i32
    return %arg0, %c0_i32, %arg1 : i32, i32, i32
  }
  func.func @transform_1(%arg0: i32, %arg1: i32) -> (i32, i32, i32) {
    %c0_i32 = arith.constant 0 : i32
    %c0_i32_0 = arith.constant 0 : i32
    %c0_i32_1 = arith.constant 0 : i32
    return %arg0, %c0_i32, %c0_i32_0 : i32, i32, i32
  }
  func.func @transform_2(%arg0: i32, %arg1: i32) -> (i32, i32) {
    %c0_i32 = arith.constant 0 : i32
    %c0_i32_0 = arith.constant 0 : i32
    %c0_i32_1 = arith.constant 0 : i32
    return %c0_i32, %c0_i32_0 : i32, i32
  }
  func.func @transform_3(%arg0: i32, %arg1: i32) -> (i32, i32, i32) {
    %c0_i32 = arith.constant 0 : i32
    %c0_i32_0 = arith.constant 0 : i32
    return %arg0, %c0_i32, %arg1 : i32, i32, i32
  }
}

</mosaic_0001>

<bundles_post_ra>
// kernel: tpu_custom_call.1
= control target key start
LH: loop header
LB: loop body
LE: loop exit
PB: predicated region body
PF: predicated region fallthrough
CT: control target
= control target key end

     0   :  { %8 = vsyncpa [#allocation3], 0  ;;  %s817_s0 = inlined_call_operand.hbm [shape: f32[2,4,256], index: 0, kind: input, shape index: {}]   ;;  %s818_s1 = inlined_call_operand.vmem [shape: f32[2,4,1], index: 1, kind: input, shape index: {}]   ;;  %s819_s2 = inlined_call_operand.vmem [shape: f32[4,1], index: 2, kind: input, shape index: {}]   ;;  %s820_s3 = inlined_call_operand.hbm [shape: f32[2,4,256], index: 3, kind: output, shape index: {}]  }
   0x1   :  { %10 = vsyncpa [#allocation3 + $0x1], 0 }
   0x2   :  { %11 = vsyncpa [#allocation4], 0 }
   0x3   :  { %13 = vsyncpa [#allocation4 + $0x1], 0  ;;  %s633_s12 = smov 0   ;;  %s635_s13 = smov 0  }
   0x4   :  { %s637_s14 = smov 0   ;;  %s639_s15 = smov 0  }
   0x5   :  { %s641_s16 = smov 0   ;;  %s643_s17 = smov 0  }
   0x6 LB: > { %s402_s18 = sadd.s32 4294967295, %s607_s17   ;;  %s403_s19 = sadd.s32 4294967294, %s607_s17   ;;  %s607_s17 = sphi %s643_s17, %s19_s17   ;;  %s603_s16 = sphi %s641_s16, %s836_s16   ;;  %s599_s15 = sphi %s639_s15, %s835_s15   ;;  %s595_s14 = sphi %s637_s14, %s834_s14   ;;  %s591_s13 = sphi %s635_s13, %s833_s13   ;;  %s587_s12 = sphi %s633_s12, %s832_s12  }
   0x7   : > { %s31_s20 = sadd.s32 1, %s603_s16  ;;  %s40_s21 = sadd.s32 1, %s595_s14 }
   0x8   : > { %p33_p0 = scmp.ge.s32.totalorder %s31_s20, 2  ;;  %p47_p1 = scmp.ne.s32.totalorder %s595_s14, %s591_s13 }
   0x9   : > { %p48_p2 = scmp.eq.s32.totalorder %s607_s17, 0  ;;  %p53_p3 = scmp.ne.s32.totalorder %s591_s13, %s587_s12 }
   0xa   : > { %s838_s20 = smov (%p33_p0, %s31_s20), 0  ;;  %p54_p5 = scmp.eq.s32.totalorder %s402_s18, 0 }
   0xb   : > { %p674_p4 = por %p48_p2, %p47_p1  ;;  %s35_s23 = ssub.s32 %s603_s16, %s838_s20 }
   0xc   : > { %p126_p6 = scmp.eq.s32.totalorder %s402_s18, 1  ;;  %p38_p7 = scmp.eq.s32.totalorder %s35_s23, 0 }
   0xd   : > { %p680_p8 = por %p54_p5, %p53_p3  ;;  %p132_p10 = scmp.eq.s32.totalorder %s403_s19, 1 }
   0xe   : > { %p684_p9 = por %p126_p6, %p47_p1  ;;  %p434_p13 = scmp.lt.s32.totalorder %s607_s17, 2 }
   0xf   : > { %s689_s26 = scalar_select %p38_p7, %s595_s14, %s40_s21  }
  0x10   : > { %s824_s25 = scalar_select %p684_p9, 1, 0 }
  0x11   : > { %p691_p11 = por %p132_p10, %p53_p3  ;;  %s155_s28 = sand.u32 1, %s595_s14  }
  0x12   : > { %s406_s29 = sshll.u32 %s155_s28, 3  ;;  %s420_s30 = sshll.u32 %s603_s16, 7 }
  0x13   : > { %s825_s27 = scalar_select %p691_p11, 1, 0 }
  0x14   : > { %s702_s6 = scalar_lea.hbm %s817_s0, %s420_s30  ;;  %s159_s7 = scalar_lea.vmem [#allocation2], %s406_s29 }
  0x15   : > { %s169_s8 = sshll.u32 %s159_s7, 4  ;;  %p708_p0 = pnand %p434_p13, %p674_p4  ;;  %s704_s8 = int_to_ptr.vmem [resolvable:$true] %s169_s8 }
  0x16   : > { %s156_s10 = scalar_lea.sflag [#allocation3], %s155_s28  ;;  %s495_s11 = scalar_lea.hbm %s702_s6, 128 }
  0x17   : > { %p496_p3 = scmp.ne.s32.totalorder %s702_s6, %s495_s11  ;;  %p497_p5 = pneg %p708_p0 }
  0x18   : > { %s500_s21 = scalar_lea.hbm %s817_s0, 256  ;;  %p501_p4 = scmp.lt.u32.totalorder %s702_s6, %s817_s0 }
  0x19   : > { %p498_p6 = pnand %p497_p5, %p496_p3  ;;  %p502_p10 = scmp.lt.u32.totalorder %s500_s21, %s495_s11 }
  0x1a   : > { %p504_p12 = scmp.lt.u32.totalorder %s495_s11, %s702_s6 }
  0x1b   : > { %p499_p7 = pneg %p498_p6  ;;  %p503_p13 = por %p502_p10, %p501_p4 }
  0x1d   : > { %p505_p1 = por %p504_p12, %p503_p13 }
  0x1f   : > { %p506_p2 = pnand %p505_p1, %p499_p7 }
  0x21   : > { %509 = shalt.err (!%p506_p2)
}
  0x22   : > { %s510_s28 = scalar_lea.vmem %s704_s8, 128  ;;  %s609_s29 = smov [#allocation2]  }
  0x23   : > { %p511_p3 = scmp.ne.s32.totalorder %s704_s8, %s510_s28  ;;  %s515_s30 = sshll.u32 %s609_s29, 4  ;;  %s516_s30 = int_to_ptr.vmem [resolvable:$false] %s515_s30 }
  0x24   : > { %s517_s4 = scalar_lea.vmem %s516_s30, 256  ;;  %p518_p9 = scmp.lt.s32.totalorder %s704_s8, %s516_s30 }
  0x25   : > { %p513_p6 = pnand %p511_p3, %p497_p5  ;;  %p519_p4 = scmp.lt.s32.totalorder %s517_s4, %s510_s28 }
  0x27   : > { %p514_p11 = pneg %p513_p6  ;;  %p520_p10 = por %p519_p4, %p518_p9 }
  0x29   : > { %p521_p12 = pnand %p520_p10, %p514_p11 }
  0x2b   : > { %524 = shalt.err (!%p521_p12)
}
  0x2c   : > { %429 = dma.hbm_to_vmem [thread:$0]  (!%p708_p0), %s702_s6, 128, %s704_s8, %s156_s10  }
  0x2d   : > { %p827_p1 = scmp.lt.s32.totalorder %s607_s17, 3  ;;  %p828_p2 = scmp.ge.s32.totalorder %s607_s17, 1 }
  0x2f   : > { %p182_p5 = pnand %p828_p2, %p827_p1 }
  0x30   : > { %s744_s5 = sand.u32 (!%p182_p5), 1, %s591_s13  }
  0x31   : > { %185 = sbr.rel (%p182_p5) target bundleno = 250 (0xfa), region = 32  ;;  %s410_s7 = sshll.u32 (!%p182_p5), %s744_s5, 3 }
  0x32   : > { %s188_s11 = scalar_lea.sflag (!%p182_p5), [#allocation3], %s744_s5  ;;  %s191_s9 = scalar_lea.vmem (!%p182_p5), [#allocation2], %s410_s7 }
  0x38   : > { %578 = dma.done.wait (%p680_p8), %s188_s11, 128  }
  0x39   : > { %580 = vsyncadd (%p680_p8), %s188_s11, 4294967168  ;;  %p219_p9 = scmp.lt.s32.totalorder %s599_s15, 1  ;;  %v610_v0 = vmov 0   ;;  %v225_v1 = vld [vmem:[%s819_s2] sm:$0xf]  ;;  %v233_v5 = vlaneseq  ;;  %vm242_vm0 = vcmask 1043456  }
  0x3a   : > { %486 = vset.pattern.permute.xlu0 %v610_v0  ;;  %v611_v3 = vmov 839922192   ;;  %v224_v10 = vld [vmem:[%s191_s9] sm:$0xff]  ;;  %s421_s24 = sshll.u32 %s599_s15, 7  ;;  %s217_s23 = scalar_lea.vmem [#allocation5], %s410_s7 }
  0x3b   : > { %s220_s6 = scalar_select %p219_p9, %s599_s15, 1  ;;  %228 = vperm.xlu0 %486, %v225_v1   ;;  %v231_v4 = vunpack.c.l.s4 %v611_v3  ;;  %v234_v7 = vshrl.u32 %v233_v5, 7 }
  0x3c   : > { %s306_s28 = sshll.u32 %s217_s23, 4  ;;  %s768_s4 = scalar_lea.hbm %s820_s3, %s421_s24  ;;  %s770_s28 = int_to_ptr.vmem [resolvable:$true] %s306_s28 }
  0x3d   : > { %s412_s8 = sshll.u32 %s220_s6, 2  ;;  %v232_v6 = vunpack.c.0.s8 %v231_v4  ;;  %s290_s11 = scalar_lea.sflag [#allocation4], %s744_s5 }
  0x3e   : > { %s222_s19 = scalar_lea.vmem %s818_s1, %s412_s8  ;;  %s525_s9 = scalar_lea.vmem %s770_s28, 128 }
  0x3f   : > { %v269_v2 = vld [vmem:[%s222_s19] sm:$0xf]  ;;  %v235_v8 = vsub.s32 %v232_v6, %v234_v7  ;;  %p526_p8 = scmp.ne.s32.totalorder %s770_s28, %s525_s9  ;;  %p829_p11 = scmp.ne.s32.totalorder %s824_s25, 0 }
  0x40   : > { %272 = vperm.xlu0 %486, %v269_v2   ;;  %s612_s15 = smov [#allocation5]  }
  0x41   : > { %p527_p0 = pnand %p526_p8, %p829_p11  ;;  %s529_s7 = sshll.u32 %s612_s15, 4  ;;  %s530_s7 = int_to_ptr.vmem [resolvable:$false] %s529_s7 }
  0x42   : > { %s531_s6 = scalar_lea.vmem %s530_s7, 256  ;;  %p532_p13 = scmp.lt.s32.totalorder %s770_s28, %s530_s7 }
  0x43   : > { %p528_p7 = pneg %p527_p0  ;;  %p533_p3 = scmp.lt.s32.totalorder %s531_s6, %s525_s9 }
  0x45   : > { %p534_p6 = por %p533_p3, %p532_p13 }
  0x47   : > { %p535_p4 = pnand %p534_p6, %p528_p7 }
  0xba   : > { %v229_v9 = vpop.permute.xlu0 %228 }
  0xbb   : > { %v236_v11 = vrot.slane %v229_v9, %v235_v8 }
  0xbd   : > { %v238_v12 = vmul.f32 %v236_v11, %v224_v10 }
  0xbf   : > { %v240_v13 = vcombine.high %v238_v12, %v238_v12  ;;  %v243_v14 = vsel %vm242_vm0, %v238_v12, 0.0  ;;  %v273_v34 = vpop.permute.xlu0 %272 }
  0xc0   : > { %v244_v15 = vrot.slane %v243_v14, 4  ;;  %v280_v35 = vrot.slane %v273_v34, %v235_v8 }
  0xc1   : > { %v250_v16 = vsel %vm242_vm0, %v240_v13, 0.0 }
  0xc2   : > { %v245_v17 = vadd.f32 %v244_v15, %v243_v14  ;;  %v251_v18 = vrot.slane %v250_v16, 4  ;;  %v282_v38 = vmul.f32 %v280_v35, %v224_v10 }
  0xc4   : > { %v246_v19 = vrot.slane %v245_v17, 2  ;;  %v252_v20 = vadd.f32 %v251_v18, %v250_v16 }
  0xc6   : > { %v247_v21 = vadd.f32 %v246_v19, %v245_v17  ;;  %v253_v22 = vrot.slane %v252_v20, 2 }
  0xc8   : > { %v248_v23 = vrot.slane %v247_v21, 1  ;;  %v254_v24 = vadd.f32 %v253_v22, %v252_v20 }
  0xca   : > { %v249_v25 = vadd.f32 %v248_v23, %v247_v21  ;;  %v255_v26 = vrot.slane %v254_v24, 1 }
  0xcc   : > { %v256_v27 = vadd.f32 %v255_v26, %v254_v24  ;;  %v413_v28 = vmul.f32 -1.442695, %v249_v25 }
  0xce   : > { %487 = vpow2.f32 %v413_v28  ;;  %v414_v29 = vmul.f32 -1.442695, %v256_v27 }
  0xd0   : > { %489 = vpow2.f32 %v414_v29 }
  0xd8   : > { %v488_v30 = vpop.eup %487 }
  0xd9   : > { %v263_v31 = vadd.f32 1.0, %v488_v30 }
  0xda   : > { %v490_v32 = vpop.eup %489 }
  0xdb   : > { %v264_v33 = vadd.f32 1.0, %v490_v32  ;;  %491 = vrcp.f32 %v263_v31 }
  0xdd   : > { %493 = vrcp.f32 %v264_v33 }
  0xe5   : > { %v492_v36 = vpop.eup %491 }
  0xe7   : > { %v494_v37 = vpop.eup %493 }
  0xe8   : > { %v285_v39 = vcombine.low %v492_v36, %v494_v37 }
  0xea   : > { %v287_v40 = vmul.f32 %v285_v39, %v282_v38 }
  0xec   : > { %288 = vst [vmem:[%s217_s23] sm:$0xff] %v287_v40 }
  0xed   : > { %538 = shalt.err (!%p535_p4)
}
  0xee   : > { %s539_s5 = scalar_lea.hbm %s768_s4, 128  ;;  %s543_s18 = scalar_lea.hbm %s820_s3, 256 }
  0xef   : > { %p540_p10 = scmp.ne.s32.totalorder %s768_s4, %s539_s5  ;;  %p544_p2 = scmp.lt.u32.totalorder %s768_s4, %s820_s3 }
  0xf0   : > { %p545_p5 = scmp.lt.u32.totalorder %s543_s18, %s539_s5  ;;  %p547_p8 = scmp.lt.u32.totalorder %s539_s5, %s768_s4 }
  0xf1   : > { %p541_p12 = pnand %p540_p10, %p829_p11 }
  0xf2   : > { %p546_p9 = por %p545_p5, %p544_p2 }
  0xf3   : > { %p542_p1 = pneg %p541_p12 }
  0xf4   : > { %p548_p0 = por %p547_p8, %p546_p9 }
  0xf6   : > { %p549_p7 = pnand %p548_p0, %p542_p1 }
  0xf8   : > { %552 = shalt.err (!%p549_p7)
}
  0xf9   : > { %424 = dma.vmem_to_hbm [thread:$0]  (%p829_p11), %s770_s28, 128, %s768_s4, %s290_s11  }
  0xfa PF: > { %s318_s22 = sand.u32 1, %s587_s12   ;;  %p830_p13 = scmp.ne.s32.totalorder %s825_s27, 0 }
  0xfb   : > { %p831_p3 = scmp.ge.s32.totalorder %s607_s17, 2  ;;  %s319_s24 = scalar_lea.sflag [#allocation4], %s318_s22 }
  0xfd   : > { %p431_p6 = pnand %p831_p3, %p830_p13 }
  0xff   : > { %582 = dma.done.wait (!%p431_p6), %s319_s24, 128  }
 0x100   : > { %584 = vsyncadd (!%p431_p6), %s319_s24, 4294967168  ;;  %s19_s17 = sadd.s32 1, %s607_s17   ;;  %s832_s12 = smov %s591_s13 }
 0x101   : > { %p16_p4 = scmp.ge.s32.totalorder %s19_s17, 4   ;;  %s833_s13 = smov %s595_s14 }
 0x102   : > { %s834_s14 = smov %s689_s26  ;;  %s835_s15 = smov %s603_s16 }
 0x103   : > { %s836_s16 = smov %s838_s20  ;;  %18 = sbr.rel (!%p16_p4) target bundleno = 6 (0x6), region = 80 }
 0x10a   :  { %324 = vsyncpa [#allocation3], 1 }
 0x10b   :  { %326 = vsyncpa [#allocation3 + $0x1], 1 }
 0x10c   :  { %327 = vsyncpa [#allocation4], 1 }
 0x10d   :  { %329 = vsyncpa [#allocation4 + $0x1], 1 }

</bundles_post_ra>
